<compile_context>
chip_gen: v7x
topology: tpu7x:2x2x1
jax: 0.10.0
libtpu: 0.0.40
codegen_flags: <defaults>
</compile_context>

<pallas_src>
import functools

import jax
import jax.numpy as jnp
from jax import lax
from jax.experimental import pallas as pl
from jax.experimental.pallas import tpu as pltpu


_NEG_INF = -1e30


def _round_up(x, m):
    return ((x + m - 1) // m) * m


def _flash_attn_kernel(q_ref, k_ref, v_ref, o_ref, m_scr, l_scr, acc_scr, *,
                       inv_scale, n_valid_last, need_key_mask, mm_dtype,
                       out_lane_pad):
    kv = pl.program_id(1)
    n_kv = pl.num_programs(1)

    @pl.when(kv == 0)
    def _init():
        m_scr[...] = jnp.full(m_scr.shape, -jnp.inf, dtype=m_scr.dtype)
        l_scr[...] = jnp.zeros(l_scr.shape, dtype=l_scr.dtype)
        acc_scr[...] = jnp.zeros(acc_scr.shape, dtype=acc_scr.dtype)

    # 1/scale folded into the narrow Q tile (tq x d_qk multiplies instead of
    # tq x tk every KV step); operands cast to bf16 so QK^T runs on the native
    # MXU path on every generation, with f32 accumulation.
    q = q_ref[...].astype(jnp.float32)
    if inv_scale != 1.0:
        q = q * inv_scale
    q = q.astype(mm_dtype)
    k = k_ref[...].astype(mm_dtype)
    v = v_ref[...]

    # scores = Q @ K^T, contracting the last dims (no materialized transpose).
    s = lax.dot_general(q, k,
                        dimension_numbers=(((1,), (1,)), ((), ())),
                        preferred_element_type=jnp.float32)

    if need_key_mask:
        tk = v.shape[0]

        def _mask_last_tile(s_in, v_in):
            col = lax.broadcasted_iota(jnp.int32, (1, tk), 1)
            s_m = jnp.where(col < n_valid_last, s_in, _NEG_INF)
            # Zero the V tail rows so garbage (possibly NaN/Inf) in the ragged
            # block overhang cannot leak through p @ V.
            row = lax.broadcasted_iota(jnp.int32, (tk, 1), 0)
            v_m = jnp.where(row < n_valid_last, v_in, jnp.zeros_like(v_in))
            return s_m, v_m

        # Only the final KV tile contains out-of-range keys; gate the masking
        # VPU work behind the scalar predicate instead of paying it every step.
        s, v = lax.cond(kv == n_kv - 1, _mask_last_tile,
                        lambda s_in, v_in: (s_in, v_in), s, v)

    # Online (streaming) softmax update with f32 accumulators.
    m_prev = m_scr[...]
    m_new = jnp.maximum(m_prev, jnp.max(s, axis=-1, keepdims=True))
    alpha = jnp.exp(m_prev - m_new)
    p = jnp.exp(s - m_new)
    l_scr[...] = alpha * l_scr[...] + jnp.sum(p, axis=-1, keepdims=True)
    acc_scr[...] = alpha * acc_scr[...] + jnp.dot(
        p.astype(mm_dtype), v.astype(mm_dtype),
        preferred_element_type=jnp.float32)
    m_scr[...] = m_new

    # TODO(synk): dropout_p > 0 would need pltpu.prng_seed/prng_random_bits on p.

    @pl.when(kv == n_kv - 1)
    def _finalize():
        inv_l = pl.reciprocal(l_scr[...], approx=True)   # EUP slot, ~free
        out = (acc_scr[...] * inv_l).astype(o_ref.dtype)
        if out_lane_pad > 0:
            # Lane-dense (multiple-of-128) output slab -> unmasked vector stores.
            out = jnp.concatenate(
                [out, jnp.zeros((out.shape[0], out_lane_pad), out.dtype)],
                axis=-1)
        o_ref[...] = out


def model_forward(query, key, value, scale=1.0, *, n_q=1, n_k=1, d_qk=32, d_v=32,
                  tq_max=512, tk_max=1024):
    """Pallas equivalent of Model.forward (dropout_p = 0.0)."""
    orig_dtype = query.dtype

    # Same flatten semantics as torch's .view(-1, n*d): attention runs over the
    # flattened (batch*seq) axis (cross-batch), matching the PyTorch module.
    v_query = query.reshape(-1, n_q * d_qk)
    v_key = key.reshape(-1, n_k * d_qk)
    v_value = value.reshape(-1, n_k * d_v)

    M, Dqk = v_query.shape
    N, Dv = v_value.shape
    assert v_key.shape == (N, Dqk)

    # ---- tile selection (no materialized operand padding) ------------------
    # A row-tile is legal if it is a multiple of 8 sublanes or equals the full
    # array dim; feature dims stay at full (native) width.
    def _row_tile(dim, tmax):
        return dim if dim <= tmax else (tmax // 8) * 8

    tk = _row_tile(N, tk_max)
    tq = _row_tile(M, tq_max)
    # v7x shards the "parallel" grid axis across 2 TensorCores: guarantee at
    # least 2 Q-tile programs whenever M is big enough to split (cheap on
    # 1-TC chips at these sizes; keeps both v7x cores busy).
    if M > 8 and pl.cdiv(M, tq) < 2:
        tq = max(8, _round_up((M + 1) // 2, 8))

    grid = (pl.cdiv(M, tq), pl.cdiv(N, tk))
    n_valid_last = N - (grid[1] - 1) * tk
    need_key_mask = (n_valid_last != tk)      # only the ragged last KV tile

    Dv_out = _round_up(Dv, 128)               # lane-dense output slab
    out_lane_pad = Dv_out - Dv

    # bf16 operands for both matmuls (f32 accumulation) = native MXU rate.
    mm_dtype = jnp.bfloat16 if orig_dtype == jnp.float32 else orig_dtype

    kernel = functools.partial(
        _flash_attn_kernel,
        inv_scale=1.0 / float(scale),
        n_valid_last=n_valid_last,
        need_key_mask=need_key_mask,
        mm_dtype=mm_dtype,
        out_lane_pad=out_lane_pad)

    out_p = pl.pallas_call(
        kernel,
        out_shape=jax.ShapeDtypeStruct((M, Dv_out), orig_dtype),
        grid_spec=pltpu.PrefetchScalarGridSpec(
            num_scalar_prefetch=0,
            grid=grid,
            in_specs=[
                pl.BlockSpec((tq, Dqk), lambda qi, ki: (qi, 0)),   # Q tile
                pl.BlockSpec((tk, Dqk), lambda qi, ki: (ki, 0)),   # K tile
                pl.BlockSpec((tk, Dv), lambda qi, ki: (ki, 0)),    # V tile
            ],
            out_specs=pl.BlockSpec((tq, Dv_out), lambda qi, ki: (qi, 0)),
            scratch_shapes=[
                pltpu.VMEM((tq, 1), jnp.float32),     # running max m
                pltpu.VMEM((tq, 1), jnp.float32),     # running denom l
                pltpu.VMEM((tq, Dv), jnp.float32),    # f32 accumulator
            ]),
        compiler_params=pltpu.CompilerParams(
            dimension_semantics=("parallel", "arbitrary"),
            # Generous cap (actual footprint ~10 MiB at tq=512/tk=1024); kept
            # safely below the 64 MiB physical VMEM of a v7x TensorCore.
            vmem_limit_bytes=48 * 1024 * 1024),
    )(v_query, v_key, v_value)

    out = out_p[:, :Dv] if out_lane_pad else out_p
    return out.reshape(query.shape[:-1] + (-1,))


def _reference(query, key, value, scale, n_q, n_k, d_qk, d_v):
    vq = query.reshape(-1, n_q * d_qk).astype(jnp.float32)
    vk = key.reshape(-1, n_k * d_qk).astype(jnp.float32)
    vv = value.reshape(-1, n_k * d_v).astype(jnp.float32)
    s = (vq @ vk.T) / scale
    p = jax.nn.softmax(s, axis=-1)
    out = (p @ vv).astype(query.dtype)
    return out.reshape(query.shape[:-1] + (-1,))


if __name__ == "__main__":
    # Module hyper-params for this synthetic instance.
    n_q, n_k, d_qk, d_v = 1, 1, 32, 32
    root = jax.random.PRNGKey(0)
    k1, k2, k3, k4, k5, k6 = jax.random.split(root, 6)

    # Case 1: small, evenly tiled (B=2, S=8, hidden=32), scale=2.0.
    q1 = jax.random.normal(k1, (2, 8, n_q * d_qk), dtype=jnp.float32)
    key1 = jax.random.normal(k2, (2, 8, n_k * d_qk), dtype=jnp.float32)
    val1 = jax.random.normal(k3, (2, 8, n_k * d_v), dtype=jnp.float32)
    out1 = model_forward(q1, key1, val1, 2.0, n_q=n_q, n_k=n_k, d_qk=d_qk, d_v=d_v)
    jax.block_until_ready(out1)
    ref1 = _reference(q1, key1, val1, 2.0, n_q, n_k, d_qk, d_v)
    assert out1.shape == ref1.shape, (out1.shape, ref1.shape)
    # tolerance covers bf16 matmul operands + approx (EUP) reciprocal
    assert jnp.allclose(out1, ref1, atol=5e-2, rtol=5e-2), (
        "case1 mismatch, max abs err %f" % float(jnp.max(jnp.abs(out1 - ref1))))

    # Case 2: ragged Q/KV tiles + last-tile key masking (M = N = 200, tile 128).
    q2 = jax.random.normal(k4, (10, 20, n_q * d_qk), dtype=jnp.float32)
    key2 = jax.random.normal(k5, (10, 20, n_k * d_qk), dtype=jnp.float32)
    val2 = jax.random.normal(k6, (10, 20, n_k * d_v), dtype=jnp.float32)
    out2 = model_forward(q2, key2, val2, 1.3, n_q=n_q, n_k=n_k, d_qk=d_qk,
                         d_v=d_v, tq_max=128, tk_max=128)
    jax.block_until_ready(out2)
    ref2 = _reference(q2, key2, val2, 1.3, n_q, n_k, d_qk, d_v)
    assert out2.shape == ref2.shape, (out2.shape, ref2.shape)
    assert jnp.allclose(out2, ref2, atol=5e-2, rtol=5e-2), (
        "case2 mismatch, max abs err %f" % float(jnp.max(jnp.abs(out2 - ref2))))

    print("KERNEL_OK")
</pallas_src>

<mosaic_0001>
module attributes {stable_mosaic.version = 11 : i64} {
  func.func @_flash_attn_kernel(%arg0: i32, %arg1: i32, %arg2: memref<8x32xf32, #tpu.memory_space<vmem>>, %arg3: memref<16x32xf32, #tpu.memory_space<vmem>>, %arg4: memref<16x32xf32, #tpu.memory_space<vmem>>, %arg5: memref<8x128xf32, #tpu.memory_space<vmem>>, %arg6: memref<8x1xf32, #tpu.memory_space<vmem>>, %arg7: memref<8x1xf32, #tpu.memory_space<vmem>>, %arg8: memref<8x32xf32, #tpu.memory_space<vmem>>) attributes {dimension_semantics = [#tpu.dimension_semantics<parallel>, #tpu.dimension_semantics<arbitrary>], iteration_bounds = array<i64: 2, 1>, scalar_prefetch = 0 : i64, scratch_operands = 3 : i64, tpu.core_type = #tpu.core_type<tc>, window_params = [{transform_indices = @transform_0, window_bounds = array<i64: 8, 32>}, {transform_indices = @transform_1, window_bounds = array<i64: 16, 32>}, {transform_indices = @transform_2, window_bounds = array<i64: 16, 32>}, {transform_indices = @transform_3, window_bounds = array<i64: 8, 128>}]} {
    %c0_i32 = arith.constant 0 : i32
    %0 = arith.cmpi eq, %arg1, %c0_i32 : i32
    %1 = arith.extui %0 : i1 to i32
    %c0_i32_0 = arith.constant 0 : i32
    %2 = arith.cmpi ne, %1, %c0_i32_0 : i32
    scf.if %2 {
      %cst_24 = arith.constant 0xFF800000 : f32
      %38 = vector.broadcast %cst_24 : f32 to vector<8x1xf32>
      %c0_25 = arith.constant 0 : index
      %c0_26 = arith.constant 0 : index
      %39 = vector.load %arg6[%c0_25, %c0_26] : memref<8x1xf32, #tpu.memory_space<vmem>>, vector<8x1xf32>
      tpu.vector_store %arg6[%c0_25, %c0_26], %38 {strides = array<i32>} : memref<8x1xf32, #tpu.memory_space<vmem>>, vector<8x1xf32>,
      %cst_27 = arith.constant 0.000000e+00 : f32
      %40 = vector.broadcast %cst_27 : f32 to vector<8x1xf32>
      %c0_28 = arith.constant 0 : index
      %c0_29 = arith.constant 0 : index
      %41 = vector.load %arg7[%c0_28, %c0_29] : memref<8x1xf32, #tpu.memory_space<vmem>>, vector<8x1xf32>
      tpu.vector_store %arg7[%c0_28, %c0_29], %40 {strides = array<i32>} : memref<8x1xf32, #tpu.memory_space<vmem>>, vector<8x1xf32>,
      %cst_30 = arith.constant 0.000000e+00 : f32
      %42 = vector.broadcast %cst_30 : f32 to vector<8x32xf32>
      %c0_31 = arith.constant 0 : index
      %c0_32 = arith.constant 0 : index
      %43 = vector.load %arg8[%c0_31, %c0_32] : memref<8x32xf32, #tpu.memory_space<vmem>>, vector<8x32xf32>
      tpu.vector_store %arg8[%c0_31, %c0_32], %42 {strides = array<i32>} : memref<8x32xf32, #tpu.memory_space<vmem>>, vector<8x32xf32>,
    } else {
    }
    %c0 = arith.constant 0 : index
    %c0_1 = arith.constant 0 : index
    %3 = vector.load %arg2[%c0, %c0_1] : memref<8x32xf32, #tpu.memory_space<vmem>>, vector<8x32xf32>
    %cst = arith.constant 5.000000e-01 : f32
    %4 = vector.broadcast %cst : f32 to vector<8x32xf32>
    %5 = arith.mulf %3, %4 : vector<8x32xf32>
    %6 = arith.truncf %5 : vector<8x32xf32> to vector<8x32xbf16>
    %c0_2 = arith.constant 0 : index
    %c0_3 = arith.constant 0 : index
    %7 = vector.load %arg3[%c0_2, %c0_3] : memref<16x32xf32, #tpu.memory_space<vmem>>, vector<16x32xf32>
    %8 = arith.truncf %7 : vector<16x32xf32> to vector<16x32xbf16>
    %c0_4 = arith.constant 0 : index
    %c0_5 = arith.constant 0 : index
    %9 = vector.load %arg4[%c0_4, %c0_5] : memref<16x32xf32, #tpu.memory_space<vmem>>, vector<16x32xf32>
    %cst_6 = arith.constant dense<0.000000e+00> : vector<8x16xf32>
    %10 = tpu.matmul %6, %8, %cst_6 {dimension_numbers = #tpu.dot_dimension_numbers<[1], [1], [0], [0], [0, 0, 1, 0], [], []>} : vector<8x32xbf16>, vector<16x32xbf16>, vector<8x16xf32> -> vector<8x16xf32>
    %c0_7 = arith.constant 0 : index
    %c0_8 = arith.constant 0 : index
    %11 = vector.load %arg6[%c0_7, %c0_8] : memref<8x1xf32, #tpu.memory_space<vmem>>, vector<8x1xf32>
    %cst_9 = arith.constant dense<0xFF800000> : vector<8xf32>
    %12 = vector.multi_reduction <maximumf>, %10, %cst_9 [1] : vector<8x16xf32> to vector<8xf32>
    %13 = vector.shape_cast %12 : vector<8xf32> to vector<8x1xf32>
    %14 = arith.maximumf %11, %13 : vector<8x1xf32>
    %15 = arith.subf %11, %14 : vector<8x1xf32>
    %16 = math.exp %15 : vector<8x1xf32>
    %17 = vector.broadcast %14 : vector<8x1xf32> to vector<8x16xf32>
    %18 = arith.subf %10, %17 : vector<8x16xf32>
    %19 = math.exp %18 : vector<8x16xf32>
    %c0_10 = arith.constant 0 : index
    %c0_11 = arith.constant 0 : index
    %20 = vector.load %arg7[%c0_10, %c0_11] : memref<8x1xf32, #tpu.memory_space<vmem>>, vector<8x1xf32>
    %21 = arith.mulf %16, %20 : vector<8x1xf32>
    %cst_12 = arith.constant dense<0.000000e+00> : vector<8xf32>
    %22 = vector.multi_reduction <add>, %19, %cst_12 [1] : vector<8x16xf32> to vector<8xf32>
    %23 = vector.shape_cast %22 : vector<8xf32> to vector<8x1xf32>
    %24 = arith.addf %21, %23 : vector<8x1xf32>
    %c0_13 = arith.constant 0 : index
    %c0_14 = arith.constant 0 : index
    %25 = vector.load %arg7[%c0_13, %c0_14] : memref<8x1xf32, #tpu.memory_space<vmem>>, vector<8x1xf32>
    tpu.vector_store %arg7[%c0_13, %c0_14], %24 {strides = array<i32>} : memref<8x1xf32, #tpu.memory_space<vmem>>, vector<8x1xf32>,
    %c0_15 = arith.constant 0 : index
    %c0_16 = arith.constant 0 : index
    %26 = vector.load %arg8[%c0_15, %c0_16] : memref<8x32xf32, #tpu.memory_space<vmem>>, vector<8x32xf32>
    %27 = vector.broadcast %16 : vector<8x1xf32> to vector<8x32xf32>
    %28 = arith.mulf %27, %26 : vector<8x32xf32>
    %29 = arith.truncf %19 : vector<8x16xf32> to vector<8x16xbf16>
    %30 = arith.truncf %9 : vector<16x32xf32> to vector<16x32xbf16>
    %cst_17 = arith.constant dense<0.000000e+00> : vector<8x32xf32>
    %31 = tpu.matmul %29, %30, %cst_17 {dimension_numbers = #tpu.dot_dimension_numbers<[1], [0], [0], [1], [0, 0, 1, 1], [], []>} : vector<8x16xbf16>, vector<16x32xbf16>, vector<8x32xf32> -> vector<8x32xf32>
    %32 = arith.addf %28, %31 : vector<8x32xf32>
    %c0_18 = arith.constant 0 : index
    %c0_19 = arith.constant 0 : index
    %33 = vector.load %arg8[%c0_18, %c0_19] : memref<8x32xf32, #tpu.memory_space<vmem>>, vector<8x32xf32>
    tpu.vector_store %arg8[%c0_18, %c0_19], %32 {strides = array<i32>} : memref<8x32xf32, #tpu.memory_space<vmem>>, vector<8x32xf32>,
    %c0_20 = arith.constant 0 : index
    %c0_21 = arith.constant 0 : index
    %34 = vector.load %arg6[%c0_20, %c0_21] : memref<8x1xf32, #tpu.memory_space<vmem>>, vector<8x1xf32>
    tpu.vector_store %arg6[%c0_20, %c0_21], %14 {strides = array<i32>} : memref<8x1xf32, #tpu.memory_space<vmem>>, vector<8x1xf32>,
    %c0_i32_22 = arith.constant 0 : i32
    %35 = arith.cmpi eq, %arg1, %c0_i32_22 : i32
    %36 = arith.extui %35 : i1 to i32
    %c0_i32_23 = arith.constant 0 : i32
    %37 = arith.cmpi ne, %36, %c0_i32_23 : i32
    scf.if %37 {
      %c0_24 = arith.constant 0 : index
      %c0_25 = arith.constant 0 : index
      %38 = vector.load %arg7[%c0_24, %c0_25] : memref<8x1xf32, #tpu.memory_space<vmem>>, vector<8x1xf32>
      %39 = tpu.reciprocal %38 {approx = true} : vector<8x1xf32> -> vector<8x1xf32>
      %c0_26 = arith.constant 0 : index
      %c0_27 = arith.constant 0 : index
      %40 = vector.load %arg8[%c0_26, %c0_27] : memref<8x32xf32, #tpu.memory_space<vmem>>, vector<8x32xf32>
      %41 = vector.broadcast %39 : vector<8x1xf32> to vector<8x32xf32>
      %42 = arith.mulf %40, %41 : vector<8x32xf32>
      %cst_28 = arith.constant 0.000000e+00 : f32
      %43 = vector.broadcast %cst_28 : f32 to vector<8x96xf32>
      %44 = tpu.concatenate %42, %43 in 1 : vector<8x32xf32>, vector<8x96xf32> -> vector<8x128xf32>
      %c0_29 = arith.constant 0 : index
      %c0_30 = arith.constant 0 : index
      %45 = vector.load %arg5[%c0_29, %c0_30] : memref<8x128xf32, #tpu.memory_space<vmem>>, vector<8x128xf32>
      tpu.vector_store %arg5[%c0_29, %c0_30], %44 {strides = array<i32>} : memref<8x128xf32, #tpu.memory_space<vmem>>, vector<8x128xf32>,
    } else {
    }
    return
  }
  func.func @transform_0(%arg0: i32, %arg1: i32) -> (i32, i32) {
    %c0_i32 = arith.constant 0 : i32
    %c0_i32_0 = arith.constant 0 : i32
    return %arg0, %c0_i32 : i32, i32
  }
  func.func @transform_1(%arg0: i32, %arg1: i32) -> (i32, i32) {
    %c0_i32 = arith.constant 0 : i32
    %c0_i32_0 = arith.constant 0 : i32
    return %arg1, %c0_i32 : i32, i32
  }
  func.func @transform_2(%arg0: i32, %arg1: i32) -> (i32, i32) {
    %c0_i32 = arith.constant 0 : i32
    %c0_i32_0 = arith.constant 0 : i32
    return %arg1, %c0_i32 : i32, i32
  }
  func.func @transform_3(%arg0: i32, %arg1: i32) -> (i32, i32) {
    %c0_i32 = arith.constant 0 : i32
    %c0_i32_0 = arith.constant 0 : i32
    return %arg0, %c0_i32 : i32, i32
  }
}

</mosaic_0001>

<bundles_post_ra>
// kernel: tpu_custom_call.1
= control target key start
LH: loop header
LB: loop body
LE: loop exit
PB: predicated region body
PF: predicated region fallthrough
CT: control target
= control target key end

     0   :  { %8 = vsyncpa [#allocation6], 0  ;;  %s1121_s0 = inlined_call_operand.hbm [shape: f32[16,32], index: 0, kind: input, shape index: {}]   ;;  %s1122_s1 = inlined_call_operand.hbm [shape: f32[16,32], index: 1, kind: input, shape index: {}]   ;;  %s1123_s2 = inlined_call_operand.hbm [shape: f32[16,32], index: 2, kind: input, shape index: {}]   ;;  %s1124_s3 = inlined_call_operand.hbm [shape: f32[16,128], index: 3, kind: output, shape index: {}]  }
   0x1   :  { %10 = vsyncpa [#allocation6 + $0x1], 0 }
   0x2   :  { %11 = vsyncpa [#allocation9], 0 }
   0x3   :  { %12 = vsyncpa [#allocation7], 0 }
   0x4   :  { %14 = vsyncpa [#allocation7 + $0x1], 0  ;;  %s855_s12 = smov 0   ;;  %s857_s13 = smov 0  }
   0x5   :  { %s859_s14 = smov 0   ;;  %s861_s15 = smov 0  }
   0x6   :  { %s863_s16 = smov 0   ;;  %s865_s17 = smov 0  }
   0x7 LB: > { %s519_s18 = sadd.s32 4294967295, %s823_s17   ;;  %s520_s19 = sadd.s32 4294967294, %s823_s17   ;;  %s823_s17 = sphi %s865_s17, %s20_s17   ;;  %s819_s16 = sphi %s863_s16, %s1146_s16   ;;  %s815_s15 = sphi %s861_s15, %s1145_s15   ;;  %s811_s14 = sphi %s859_s14, %s1144_s14   ;;  %s807_s13 = sphi %s857_s13, %s1143_s13   ;;  %s803_s12 = sphi %s855_s12, %s1142_s12  }
   0x8   : > { %p52_p0 = scmp.ne.s32.totalorder %s807_s13, %s803_s12  ;;  %p889_p1 = scmp.eq.s32.totalorder %s519_s18, 0 }
   0x9   : > { %p893_p2 = scmp.eq.s32.totalorder %s519_s18, 1  ;;  %p134_p3 = scmp.eq.s32.totalorder %s520_s19, 1 }
   0xa   : > { %s1129_s20 = scalar_select %p889_p1, 1, 0 }
   0xb   : > { %p899_p4 = por %p889_p1, %p52_p0  ;;  %p521_p5 = scmp.ge.s32.totalorder %s823_s17, 1 }
   0xc   : > { %p904_p6 = por %p134_p3, %p52_p0  ;;  %p141_p7 = scmp.lt.s32.totalorder %s823_s17, 3 }
   0xd   : > { %s1131_s22 = scalar_select %p899_p4, 1, 0 }
   0xe   : > { %s1132_s23 = scalar_select %p904_p6, 1, 0 }
   0xf   : > { %p909_p8 = pnand %p521_p5, %p141_p7  ;;  %s825_s25 = smov [#allocation8]  }
  0x10   : > { %s156_s26 = sshll.u32 %s825_s25, 4  ;;  %s826_s28 = smov [#allocation10]   ;;  %s913_s26 = int_to_ptr.vmem [resolvable:$true] %s156_s26 }
  0x11   : > { %p566_p9 = pneg %p909_p8  ;;  %s172_s29 = sshll.u32 %s826_s28, 4  ;;  %s924_s29 = int_to_ptr.vmem [resolvable:$true] %s172_s29 }
  0x12   : > { %s651_s5 = scalar_lea.hbm %s1122_s1, 256 }
  0x13   : > { %p920_p11 = pnand %p566_p9, %p889_p1  ;;  %p652_p12 = scmp.ne.s32.totalorder %s1122_s1, %s651_s5 }
  0x14   : > { %p658_p5 = scmp.lt.u32.totalorder %s651_s5, %s1122_s1 }
  0x15   : > { %p653_p13 = pneg %p920_p11 }
  0x17   : > { %p654_p0 = pnand %p653_p13, %p652_p12 }
  0x19   : > { %p655_p3 = pneg %p654_p0 }
  0x1b   : > { %p660_p7 = pnand %p658_p5, %p655_p3 }
  0x1d   : > { %663 = shalt.err (!%p660_p7)
}
  0x1e   : > { %s664_s10 = scalar_lea.vmem %s913_s26, 256  ;;  %p672_p1 = scmp.lt.s32.totalorder %s913_s26, %s913_s26 }
  0x1f   : > { %p665_p9 = scmp.ne.s32.totalorder %s913_s26, %s664_s10  ;;  %p673_p12 = scmp.lt.s32.totalorder %s664_s10, %s664_s10 }
  0x21   : > { %p667_p10 = pnand %p665_p9, %p653_p13  ;;  %p674_p0 = por %p673_p12, %p672_p1 }
  0x23   : > { %p668_p6 = pneg %p667_p10 }
  0x25   : > { %p675_p4 = pnand %p674_p0, %p668_p6 }
  0x27   : > { %678 = shalt.err (!%p675_p4)
}
  0x28   : > { %s827_s11 = smov 128   ;;  %s828_s18 = smov 8  }
  0x29   : > { %569 = dma.hbm_to_vmem [thread:$0]  (!%p920_p11), %s1122_s1, 256, %s913_s26, [#allocation9], %s827_s11, %s827_s11, %s828_s18  }
  0x2a   : > { %s679_s4 = scalar_lea.hbm %s1123_s2, 256 }
  0x2b   : > { %p680_p1 = scmp.ne.s32.totalorder %s1123_s2, %s679_s4  ;;  %p686_p10 = scmp.lt.u32.totalorder %s679_s4, %s1123_s2 }
  0x2d   : > { %p682_p4 = pnand %p680_p1, %p653_p13 }
  0x2f   : > { %p683_p6 = pneg %p682_p4 }
  0x31   : > { %p688_p3 = pnand %p686_p10, %p683_p6 }
  0x33   : > { %691 = shalt.err (!%p688_p3)
}
  0x34   : > { %s692_s26 = scalar_lea.vmem %s924_s29, 256  ;;  %p700_p12 = scmp.lt.s32.totalorder %s924_s29, %s924_s29 }
  0x35   : > { %p693_p5 = scmp.ne.s32.totalorder %s924_s29, %s692_s26  ;;  %p701_p0 = scmp.lt.s32.totalorder %s692_s26, %s692_s26 }
  0x37   : > { %p695_p7 = pnand %p693_p5, %p653_p13  ;;  %p702_p1 = por %p701_p0, %p700_p12 }
  0x39   : > { %p696_p9 = pneg %p695_p7 }
  0x3b   : > { %p703_p4 = pnand %p702_p1, %p696_p9 }
  0x3d   : > { %706 = shalt.err (!%p703_p4)
}
  0x3e   : > { %572 = dma.hbm_to_vmem [thread:$0]  (!%p920_p11), %s1123_s2, 256, %s924_s29, [#allocation9], %s827_s11, %s827_s11, %s828_s18  }
  0x3f   : > { %s32_s19 = sadd.s32 1, %s819_s16  ;;  %s39_s25 = sadd.s32 1, %s811_s14 }
  0x40   : > { %p34_p13 = scmp.ge.s32.totalorder %s32_s19, 2  ;;  %p46_p6 = scmp.ne.s32.totalorder %s811_s14, %s807_s13 }
  0x41   : > { %p47_p10 = scmp.eq.s32.totalorder %s823_s17, 0  ;;  %p583_p3 = scmp.lt.s32.totalorder %s823_s17, 2 }
  0x42   : > { %s1148_s19 = smov (%p34_p13, %s32_s19), 0  ;;  %p988_p7 = por %p893_p2, %p46_p6 }
  0x43   : > { %p48_p5 = por %p47_p10, %p46_p6  ;;  %s36_s28 = ssub.s32 %s819_s16, %s1148_s19 }
  0x44   : > { %s1135_s27 = scalar_select %p988_p7, 1, 0 }
  0x45   : > { %s186_s30 = sand.u32 1, %s811_s14   ;;  %p37_p9 = scmp.eq.s32.totalorder %s36_s28, 0 }
  0x46   : > { %s525_s29 = sshll.u32 %s186_s30, 3  ;;  %s526_s11 = sshll.u32 %s819_s16, 7 }
  0x47   : > { %s997_s18 = scalar_select %p37_p9, %s811_s14, %s39_s25  }
  0x48   : > { %s1002_s6 = scalar_lea.hbm %s1121_s0, %s526_s11  ;;  %s190_s21 = scalar_lea.vmem [#allocation5], %s525_s29 }
  0x49   : > { %s197_s7 = sshll.u32 %s190_s21, 4  ;;  %p1006_p2 = pnand %p583_p3, %p48_p5  ;;  %s1010_s7 = int_to_ptr.vmem [resolvable:$true] %s197_s7 }
  0x4a   : > { %s187_s26 = scalar_lea.sflag [#allocation6], %s186_s30  ;;  %s707_s9 = scalar_lea.hbm %s1002_s6, 128 }
  0x4b   : > { %p708_p11 = scmp.ne.s32.totalorder %s1002_s6, %s707_s9  ;;  %p709_p12 = pneg %p1006_p2 }
  0x4c   : > { %s712_s28 = scalar_lea.hbm %s1121_s0, 256  ;;  %p713_p4 = scmp.lt.u32.totalorder %s1002_s6, %s1121_s0 }
  0x4d   : > { %p710_p0 = pnand %p709_p12, %p708_p11  ;;  %p714_p13 = scmp.lt.u32.totalorder %s712_s28, %s707_s9 }
  0x4e   : > { %p716_p10 = scmp.lt.u32.totalorder %s707_s9, %s1002_s6 }
  0x4f   : > { %p711_p1 = pneg %p710_p0  ;;  %p715_p6 = por %p714_p13, %p713_p4 }
  0x51   : > { %p717_p3 = por %p716_p10, %p715_p6 }
  0x53   : > { %p718_p5 = pnand %p717_p3, %p711_p1 }
  0x55   : > { %721 = shalt.err (!%p718_p5)
}
  0x56   : > { %s722_s30 = scalar_lea.vmem %s1010_s7, 128  ;;  %s829_s4 = smov [#allocation5]  }
  0x57   : > { %p723_p9 = scmp.ne.s32.totalorder %s1010_s7, %s722_s30  ;;  %s727_s5 = sshll.u32 %s829_s4, 4  ;;  %s728_s5 = int_to_ptr.vmem [resolvable:$false] %s727_s5 }
  0x58   : > { %s729_s21 = scalar_lea.vmem %s728_s5, 256  ;;  %p730_p7 = scmp.lt.s32.totalorder %s1010_s7, %s728_s5 }
  0x59   : > { %p725_p11 = pnand %p723_p9, %p709_p12  ;;  %p731_p4 = scmp.lt.s32.totalorder %s729_s21, %s722_s30 }
  0x5b   : > { %p726_p0 = pneg %p725_p11  ;;  %p732_p13 = por %p731_p4, %p730_p7 }
  0x5d   : > { %p733_p6 = pnand %p732_p13, %p726_p0 }
  0x5f   : > { %736 = shalt.err (!%p733_p6)
}
  0x60   : > { %576 = dma.hbm_to_vmem [thread:$0]  (!%p1006_p2), %s1002_s6, 128, %s1010_s7, %s187_s26  }
  0x61   : > { %206 = sbr.rel (%p909_p8) target bundleno = 929 (0x3a1), region = 32  ;;  %s1040_s9 = sand.u32 (!%p909_p8), 1, %s807_s13  }
  0x62   : > { %s528_s10 = sshll.u32 (!%p909_p8), %s1040_s9, 3  ;;  %s209_s25 = scalar_lea.sflag (!%p909_p8), [#allocation6], %s1040_s9 }
  0x63   : > { %s212_s28 = scalar_lea.vmem (!%p909_p8), [#allocation5], %s528_s10  ;;  %p1137_p7 = scmp.ne.s32.totalorder (!%p909_p8), %s1131_s22, 0 }
  0x68   : > { %790 = dma.done.wait (%p1137_p7), %s209_s25, 128  }
  0x69   : > { %792 = vsyncadd (%p1137_p7), %s209_s25, 4294967168  ;;  %p1138_p2 = scmp.ne.s32.totalorder %s1129_s20, 0 }
  0x6b   : > { %794 = dma.done.wait (%p1138_p2), [#allocation9], 512  }
  0x6c   : > { %796 = vsyncadd (%p1138_p2), [#allocation9], 4294966784  ;;  %vm253_vm0 = vcmask 261120   ;;  %v830_v0 = vmov 0.0   ;;  %vm831_vm1 = vmmov 0   ;;  %v258_v1 = vld [vmem:[#allocation8] sm:$0xff] }
  0x6d   : > { %542 = vmatprep.subr.bf16.mxu0 %v830_v0  ;;  %254 = vst.msk [vmem:[#allocation4] sm:$0xff] %vm253_vm0, %v830_v0  ;;  %544 = vmatprep.mubr.msk.bf16.mxu0 %vm831_vm1, %v830_v0  ;;  %v259_v2 = vld [vmem:[#allocation8 + $0x8] sm:$0xff]  ;;  %v255_v3 = vld [vmem:[%s212_s28] sm:$0xff]  ;;  %vm250_vm2 = vcmask 7168   ;;  %v832_v8 = vmov -inf   ;;  %vm311_vm3 = vcmask 130048  }
  0x6e   : > { %548 = vmatprep.subr.bf16.mxu1 %v830_v0  ;;  %550 = vmatprep.mubr.msk.bf16.mxu1 %vm831_vm1, %v830_v0  ;;  %v260_v4 = vpack.c.bf16 %v259_v2, %v258_v1  ;;  %v256_v6 = vmul.f32 0.5, %v255_v3  ;;  %251 = vst.msk [vmem:[#allocation2] sm:$0xff] %vm250_vm2, %v832_v8  ;;  %252 = vst.msk [vmem:[#allocation3] sm:$0xff] %vm250_vm2, %v830_v0  ;;  %v833_v14 = vmov 0   ;;  %v261_v19 = vld [vmem:[#allocation10] sm:$0xff]  ;;  %v262_v20 = vld [vmem:[#allocation10 + $0x8] sm:$0xff] }
  0x6f   : > { %643 = vset.pattern.permute.xlu0 %v833_v14  ;;  %644 = vset.pattern.permute.xlu1 %v833_v14  ;;  %v343_v21 = vpack.c.bf16 %v262_v20, %v261_v19  ;;  %s535_s20 = sshll.u32 %s815_s15, 7  ;;  %s242_s22 = scalar_lea.vmem [#allocation11], %s528_s10 }
  0x70   : > { %v268_v5 = vsel %vm253_vm0, %v260_v4, 0  ;;  %v257_v7 = vpack.c.bf16 %v256_v6, %v256_v6  ;;  %s418_s24 = sshll.u32 %s242_s22, 4  ;;  %s1071_s8 = scalar_lea.hbm %s1124_s3, %s535_s20  ;;  %s1073_s24 = int_to_ptr.vmem [resolvable:$true] %s418_s24 }
  0x71   : > { %543 = vmatpush3.bf16.xpose.msra.mxu0 %v268_v5  ;;  %549 = vmatpush3.bf16.msra.mxu1 %v343_v21  ;;  %s405_s15 = scalar_lea.sflag [#allocation7], %s1040_s9  ;;  %s737_s26 = scalar_lea.vmem %s1073_s24, 128 }
  0x72   : > { %p738_p8 = scmp.ne.s32.totalorder %s1073_s24, %s737_s26  ;;  %p1139_p12 = scmp.ne.s32.totalorder %s1135_s27, 0 }
  0x73   : > { %s834_s29 = smov [#allocation11]  }
  0x74   : > { %v335_v36 = vld [vmem:[#allocation4] sm:$0xff]  ;;  %p739_p1 = pnand %p738_p8, %p1139_p12  ;;  %s741_s11 = sshll.u32 %s834_s29, 4  ;;  %s742_s11 = int_to_ptr.vmem [resolvable:$false] %s741_s11 }
  0x75   : > { %v310_v15 = vld [vmem:[#allocation2] sm:$0xff]  ;;  %v327_v30 = vld [vmem:[#allocation3] sm:$0xff]  ;;  %s743_s30 = scalar_lea.vmem %s742_s11, 256  ;;  %p744_p3 = scmp.lt.s32.totalorder %s1073_s24, %s742_s11 }
  0x76   : > { %p740_p10 = pneg %p739_p1  ;;  %p745_p5 = scmp.lt.s32.totalorder %s743_s30, %s737_s26 }
  0x78   : > { %545 = vmatmul.mubr.msk.bf16.vlgmr.msra.gmra.mrb[0].mxu0 %vm253_vm0, %v257_v7  ;;  %p746_p9 = por %p745_p5, %p744_p3 }
  0x7a   : > { %p747_p11 = pnand %p746_p9, %p740_p10 }
 0x14b   : > { %v304_v9 = vpop.f32.mrb[0].mxu0 }
 0x14c   : > { %v546_v10 = vpop.f32.mrb[1].mxu0  ;;  %v312_v11 = vsel %vm311_vm3, %v304_v9, -inf }
 0x14d   : > { %313 = vmax.xlane.f32.xlu0 %v312_v11  ;;  %v307_v12 = vpop.f32.mrb[2].mxu0 }
 0x14e   : > { %v547_v13 = vpop.f32.mrb[3].mxu0 }
 0x1da   : > { %v314_v16 = vpop.xlane.xlu0 %313 }
 0x1db   : > { %v315_v17 = vmax.f32 %v310_v15, %v314_v16 }
 0x1dd   : > { %v316_v18 = vsub.f32 %v310_v15, %v315_v17  ;;  %389 = vst.msk [vmem:[#allocation2] sm:$0xff] %vm250_vm2, %v315_v17  ;;  %321 = vperm.xlu0 %643, %v315_v17  }
 0x1df   : > { %v317_v28 = vmul.f32 1.442695, %v316_v18 }
 0x25c   : > { %v322_v22 = vpop.permute.xlu0 %321 }
 0x25d   : > { %v324_v23 = vsub.f32 %v304_v9, %v322_v22 }
 0x25f   : > { %v325_v24 = vmul.f32 1.442695, %v324_v23 }
 0x261   : > { %645 = vpow2.f32 %v325_v24 }
 0x262   : > { %647 = vpow2.f32 %v317_v28 }
 0x26b   : > { %v646_v25 = vpop.eup %645 }
 0x26c   : > { %v329_v26 = vsel %vm311_vm3, %v646_v25, 0.0  ;;  %v342_v27 = vpack.c.bf16 %v646_v25, %v646_v25  ;;  %v648_v29 = vpop.eup %647 }
 0x26d   : > { %330 = vadd.xlane.f32.xlu1 %v329_v26  ;;  %v328_v31 = vmul.f32 %v648_v29, %v327_v30 }
 0x26e   : > { %551 = vmatmul.mubr.msk.bf16.vlgmr.msra.gmra.mrb[0].mxu1 %vm311_vm3, %v342_v27 }
 0x27e   : > { %338 = vperm.xlu1 %644, %v648_v29  }
 0x2fa   : > { %v331_v32 = vpop.xlane.xlu1 %330 }
 0x2fb   : > { %v332_v33 = vadd.f32 %v331_v32, %v328_v31 }
 0x2fd   : > { %334 = vst.msk [vmem:[#allocation3] sm:$0xff] %vm250_vm2, %v332_v33 }
 0x2fe   : > { %v339_v37 = vpop.permute.xlu1 %338 }
 0x2ff   : > { %v341_v38 = vmul.f32 %v339_v37, %v335_v36 }
 0x304   : > { %v393_v34 = vld [vmem:[#allocation3] sm:$0xff] }
 0x305   : > { %649 = vrcp.f32 %v393_v34 }
 0x30f   : > { %v650_v35 = vpop.eup %649 }
 0x310   : > { %398 = vperm.xlu1 %644, %v650_v35  }
 0x341   : > { %v381_v39 = vpop.f32.mrb[0].mxu1 }
 0x342   : > { %v387_v40 = vadd.f32 %v381_v39, %v341_v38  ;;  %v552_v41 = vpop.f32.mrb[1].mxu1 }
 0x343   : > { %v384_v42 = vpop.f32.mrb[2].mxu1 }
 0x344   : > { %388 = vst.msk [vmem:[#allocation4] sm:$0xff] %vm253_vm0, %v387_v40  ;;  %v553_v43 = vpop.f32.mrb[3].mxu1 }
 0x34b   : > { %v395_v44 = vld [vmem:[#allocation4] sm:$0xff] }
 0x38f   : > { %v399_v45 = vpop.permute.xlu1 %398 }
 0x390   : > { %v401_v46 = vmul.f32 %v399_v45, %v395_v44 }
 0x392   : > { %v402_v47 = vsel %vm253_vm0, %v401_v46, 0.0 }
 0x393   : > { %403 = vst [vmem:[%s242_s22] sm:$0xff] %v402_v47 }
 0x394   : > { %750 = shalt.err (!%p747_p11)
}
 0x395   : > { %s751_s4 = scalar_lea.hbm %s1071_s8, 128  ;;  %s755_s9 = scalar_lea.hbm %s1124_s3, 256 }
 0x396   : > { %p752_p0 = scmp.ne.s32.totalorder %s1071_s8, %s751_s4  ;;  %p756_p6 = scmp.lt.u32.totalorder %s1071_s8, %s1124_s3 }
 0x397   : > { %p757_p7 = scmp.lt.u32.totalorder %s755_s9, %s751_s4  ;;  %p759_p8 = scmp.lt.u32.totalorder %s751_s4, %s1071_s8 }
 0x398   : > { %p753_p4 = pnand %p752_p0, %p1139_p12 }
 0x399   : > { %p758_p2 = por %p757_p7, %p756_p6 }
 0x39a   : > { %p754_p13 = pneg %p753_p4 }
 0x39b   : > { %p760_p1 = por %p759_p8, %p758_p2 }
 0x39d   : > { %p761_p10 = pnand %p760_p1, %p754_p13 }
 0x39f   : > { %764 = shalt.err (!%p761_p10)
}
 0x3a0   : > { %564 = dma.vmem_to_hbm [thread:$0]  (%p1139_p12), %s1073_s24, 128, %s1071_s8, %s405_s15  }
 0x3a1 PF: > { %s430_s28 = sand.u32 1, %s803_s12   ;;  %p1140_p3 = scmp.ne.s32.totalorder %s1132_s23, 0 }
 0x3a2   : > { %p1141_p5 = scmp.ge.s32.totalorder %s823_s17, 2  ;;  %s431_s20 = scalar_lea.sflag [#allocation7], %s430_s28 }
 0x3a4   : > { %p578_p9 = pnand %p1141_p5, %p1140_p3 }
 0x3a6   : > { %798 = dma.done.wait (!%p578_p9), %s431_s20, 128  }
 0x3a7   : > { %800 = vsyncadd (!%p578_p9), %s431_s20, 4294967168  ;;  %s20_s17 = sadd.s32 1, %s823_s17   ;;  %s1142_s12 = smov %s807_s13 }
 0x3a8   : > { %p17_p11 = scmp.ge.s32.totalorder %s20_s17, 4   ;;  %s1143_s13 = smov %s811_s14 }
 0x3a9   : > { %s1144_s14 = smov %s997_s18  ;;  %s1145_s15 = smov %s819_s16 }
 0x3aa   : > { %s1146_s16 = smov %s1148_s19  ;;  %19 = sbr.rel (!%p17_p11) target bundleno = 7 (0x7), region = 95 }
 0x3b1   :  { %436 = vsyncpa [#allocation6], 1 }
 0x3b2   :  { %438 = vsyncpa [#allocation6 + $0x1], 1 }
 0x3b3   :  { %439 = vsyncpa [#allocation9], 1 }
 0x3b4   :  { %440 = vsyncpa [#allocation7], 1 }
 0x3b5   :  { %442 = vsyncpa [#allocation7 + $0x1], 1 }

</bundles_post_ra>
